<compile_context>
chip_gen: v7x
topology: tpu7x:2x2x1
jax: 0.10.0
libtpu: 0.0.40
codegen_flags: <defaults>
</compile_context>

<pallas_src>
import functools

import jax
import jax.numpy as jnp
import numpy as np
from jax.experimental import pallas as pl
from jax.experimental.pallas import tpu as pltpu


def _jsd_kernel(p_ref, q_ref, out_ref, *, scale):
    """p_ref/q_ref: (block_r, N) logits rows; out_ref: (1,1) running total."""

    @pl.when(pl.program_id(0) == 0)
    def _():
        out_ref[...] = jnp.zeros_like(out_ref)

    lp = p_ref[...].astype(jnp.float32)
    lq = q_ref[...].astype(jnp.float32)

    # Numerically stable log-softmax along the lane (last) axis.
    lp = lp - jnp.max(lp, axis=-1, keepdims=True)
    lq = lq - jnp.max(lq, axis=-1, keepdims=True)
    log_sp = lp - jnp.log(jnp.sum(jnp.exp(lp), axis=-1, keepdims=True))
    log_sq = lq - jnp.log(jnp.sum(jnp.exp(lq), axis=-1, keepdims=True))
    sp = jnp.exp(log_sp)
    sq = jnp.exp(log_sq)

    log_m = jnp.log(0.5 * (sp + sq))
    # exp(target) * (target - input) for both KL terms, summed per element.
    term = sp * (log_sp - log_m) + sq * (log_sq - log_m)

    partial = jnp.sum(term, axis=-1, keepdims=True)     # (block_r, 1)
    partial = jnp.sum(partial, axis=0, keepdims=True)   # (1, 1)
    out_ref[...] += partial * jnp.float32(scale)


def jsd_loss(p, q, *, max_block_rows=256):
    """p, q: (B, C, H, W) logits (C >= 2; only channels 0 and 1 are used).

    Returns the scalar JSD loss, matching the PyTorch JSD module.
    """
    B, C, H, W = p.shape
    assert C >= 2, "JSD uses channels 0 (VV) and 1 (VH)"
    N = H * W

    # Only channels 0/1 participate -> slice before DMA; lane-dense rows.
    p2 = p[:, :2, :, :].reshape(2 * B, N)
    q2 = q[:, :2, :, :].reshape(2 * B, N)
    R = 2 * B

    if R <= max_block_rows:
        block_r = R
        num_blocks = 1
    else:
        block_r = max_block_rows
        num_blocks = -(-R // block_r)
        r_pad = num_blocks * block_r - R
        if r_pad:
            # Identical zero-logit rows contribute exactly 0 to the JSD sum.
            p2 = jnp.pad(p2, ((0, r_pad), (0, 0)))
            q2 = jnp.pad(q2, ((0, r_pad), (0, 0)))

    kernel = functools.partial(_jsd_kernel, scale=0.5 / B)

    out = pl.pallas_call(
        kernel,
        out_shape=jax.ShapeDtypeStruct((1, 1), jnp.float32),
        grid_spec=pltpu.PrefetchScalarGridSpec(
            num_scalar_prefetch=0,
            grid=(num_blocks,),
            in_specs=[
                pl.BlockSpec((block_r, N), lambda r: (r, 0)),
                pl.BlockSpec((block_r, N), lambda r: (r, 0)),
            ],
            out_specs=pl.BlockSpec((1, 1), lambda r: (0, 0)),
        ),
        compiler_params=pltpu.CompilerParams(
            # Output accumulates across the row axis -> must be "arbitrary".
            dimension_semantics=("arbitrary",),
        ),
    )(p2, q2)
    return out[0, 0]


jsd_loss_jit = jax.jit(jsd_loss)


def _reference(p, q):
    """Pure-JAX mirror of the PyTorch JSD.forward (for verification only)."""
    B, C, H, W = p.shape
    N = H * W
    pp = jax.nn.softmax(p.reshape(B, C, N), axis=2)
    qq = jax.nn.softmax(q.reshape(B, C, N), axis=2)

    def kl(log_input, log_target):  # KLDivLoss(log_target=True, 'batchmean')
        return jnp.sum(jnp.exp(log_target) * (log_target - log_input)) / B

    p_vv, p_vh = pp[:, 0, :], pp[:, 1, :]
    q_vv, q_vh = qq[:, 0, :], qq[:, 1, :]
    m1 = jnp.log(0.5 * (p_vv + q_vv))
    m2 = jnp.log(0.5 * (p_vh + q_vh))
    jsd_vv = 0.5 * (kl(m1, jnp.log(p_vv)) + kl(m1, jnp.log(q_vv)))
    jsd_vh = 0.5 * (kl(m2, jnp.log(p_vh)) + kl(m2, jnp.log(q_vh)))
    return jsd_vv + jsd_vh


if __name__ == "__main__":
    key = jax.random.PRNGKey(0)
    k1, k2 = jax.random.split(key)

    B, C, H, W = 2, 2, 16, 16  # VV + VH channels
    p = jax.random.normal(k1, (B, C, H, W), dtype=jnp.float32)
    q = jax.random.normal(k2, (B, C, H, W), dtype=jnp.float32)

    loss = jsd_loss_jit(p, q)
    jax.block_until_ready(loss)

    ref = _reference(p, q)
    np.testing.assert_allclose(np.asarray(loss), np.asarray(ref),
                               rtol=1e-4, atol=1e-6)

    print("KERNEL_OK")
</pallas_src>

<mosaic_0001>
module attributes {stable_mosaic.version = 11 : i64} {
  func.func @_jsd_kernel(%arg0: i32, %arg1: memref<4x256xf32, #tpu.memory_space<vmem>>, %arg2: memref<4x256xf32, #tpu.memory_space<vmem>>, %arg3: memref<1x1xf32, #tpu.memory_space<vmem>>) attributes {dimension_semantics = [#tpu.dimension_semantics<arbitrary>], iteration_bounds = array<i64: 1>, scalar_prefetch = 0 : i64, scratch_operands = 0 : i64, tpu.core_type = #tpu.core_type<tc>, window_params = [{transform_indices = @transform_0, window_bounds = array<i64: 4, 256>}, {transform_indices = @transform_1, window_bounds = array<i64: 4, 256>}, {pipeline_mode = #tpu.pipeline_mode<synchronous>, transform_indices = @transform_2, window_bounds = array<i64: 1, 1>}]} {
    %c0_i32 = arith.constant 0 : i32
    %0 = arith.cmpi eq, %arg0, %c0_i32 : i32
    %1 = arith.extui %0 : i1 to i32
    %c0_i32_0 = arith.constant 0 : i32
    %2 = arith.cmpi ne, %1, %c0_i32_0 : i32
    scf.if %2 {
      %cst_15 = arith.constant 0.000000e+00 : f32
      %45 = vector.broadcast %cst_15 : f32 to vector<1x1xf32>
      %c0_16 = arith.constant 0 : index
      %c0_17 = arith.constant 0 : index
      %46 = vector.load %arg3[%c0_16, %c0_17] : memref<1x1xf32, #tpu.memory_space<vmem>>, vector<1x1xf32>
      tpu.vector_store %arg3[%c0_16, %c0_17], %45 {strides = array<i32>} : memref<1x1xf32, #tpu.memory_space<vmem>>, vector<1x1xf32>,
    } else {
    }
    %c0 = arith.constant 0 : index
    %c0_1 = arith.constant 0 : index
    %3 = vector.load %arg1[%c0, %c0_1] : memref<4x256xf32, #tpu.memory_space<vmem>>, vector<4x256xf32>
    %c0_2 = arith.constant 0 : index
    %c0_3 = arith.constant 0 : index
    %4 = vector.load %arg2[%c0_2, %c0_3] : memref<4x256xf32, #tpu.memory_space<vmem>>, vector<4x256xf32>
    %cst = arith.constant dense<0xFF800000> : vector<4xf32>
    %5 = vector.multi_reduction <maximumf>, %3, %cst [1] : vector<4x256xf32> to vector<4xf32>
    %6 = vector.shape_cast %5 : vector<4xf32> to vector<4x1xf32>
    %7 = vector.broadcast %6 : vector<4x1xf32> to vector<4x256xf32>
    %8 = arith.subf %3, %7 : vector<4x256xf32>
    %cst_4 = arith.constant dense<0xFF800000> : vector<4xf32>
    %9 = vector.multi_reduction <maximumf>, %4, %cst_4 [1] : vector<4x256xf32> to vector<4xf32>
    %10 = vector.shape_cast %9 : vector<4xf32> to vector<4x1xf32>
    %11 = vector.broadcast %10 : vector<4x1xf32> to vector<4x256xf32>
    %12 = arith.subf %4, %11 : vector<4x256xf32>
    %13 = math.exp %8 : vector<4x256xf32>
    %cst_5 = arith.constant dense<0.000000e+00> : vector<4xf32>
    %14 = vector.multi_reduction <add>, %13, %cst_5 [1] : vector<4x256xf32> to vector<4xf32>
    %15 = vector.shape_cast %14 : vector<4xf32> to vector<4x1xf32>
    %16 = math.log %15 : vector<4x1xf32>
    %17 = vector.broadcast %16 : vector<4x1xf32> to vector<4x256xf32>
    %18 = arith.subf %8, %17 : vector<4x256xf32>
    %19 = math.exp %12 : vector<4x256xf32>
    %cst_6 = arith.constant dense<0.000000e+00> : vector<4xf32>
    %20 = vector.multi_reduction <add>, %19, %cst_6 [1] : vector<4x256xf32> to vector<4xf32>
    %21 = vector.shape_cast %20 : vector<4xf32> to vector<4x1xf32>
    %22 = math.log %21 : vector<4x1xf32>
    %23 = vector.broadcast %22 : vector<4x1xf32> to vector<4x256xf32>
    %24 = arith.subf %12, %23 : vector<4x256xf32>
    %25 = math.exp %18 : vector<4x256xf32>
    %26 = math.exp %24 : vector<4x256xf32>
    %27 = arith.addf %25, %26 : vector<4x256xf32>
    %cst_7 = arith.constant 5.000000e-01 : f32
    %28 = vector.broadcast %cst_7 : f32 to vector<4x256xf32>
    %29 = arith.mulf %28, %27 : vector<4x256xf32>
    %30 = math.log %29 : vector<4x256xf32>
    %31 = arith.subf %18, %30 : vector<4x256xf32>
    %32 = arith.mulf %25, %31 : vector<4x256xf32>
    %33 = arith.subf %24, %30 : vector<4x256xf32>
    %34 = arith.mulf %26, %33 : vector<4x256xf32>
    %35 = arith.addf %32, %34 : vector<4x256xf32>
    %cst_8 = arith.constant dense<0.000000e+00> : vector<4xf32>
    %36 = vector.multi_reduction <add>, %35, %cst_8 [1] : vector<4x256xf32> to vector<4xf32>
    %37 = vector.shape_cast %36 : vector<4xf32> to vector<4x1xf32>
    %cst_9 = arith.constant dense<0.000000e+00> : vector<1xf32>
    %38 = vector.multi_reduction <add>, %37, %cst_9 [0] : vector<4x1xf32> to vector<1xf32>
    %39 = vector.shape_cast %38 : vector<1xf32> to vector<1x1xf32>
    %c0_10 = arith.constant 0 : index
    %c0_11 = arith.constant 0 : index
    %40 = vector.load %arg3[%c0_10, %c0_11] : memref<1x1xf32, #tpu.memory_space<vmem>>, vector<1x1xf32>
    %cst_12 = arith.constant 2.500000e-01 : f32
    %41 = vector.broadcast %cst_12 : f32 to vector<1x1xf32>
    %42 = arith.mulf %39, %41 : vector<1x1xf32>
    %43 = arith.addf %40, %42 : vector<1x1xf32>
    %c0_13 = arith.constant 0 : index
    %c0_14 = arith.constant 0 : index
    %44 = vector.load %arg3[%c0_13, %c0_14] : memref<1x1xf32, #tpu.memory_space<vmem>>, vector<1x1xf32>
    tpu.vector_store %arg3[%c0_13, %c0_14], %43 {strides = array<i32>} : memref<1x1xf32, #tpu.memory_space<vmem>>, vector<1x1xf32>,
    return
  }
  func.func @transform_0(%arg0: i32) -> (i32, i32) {
    %c0_i32 = arith.constant 0 : i32
    %c0_i32_0 = arith.constant 0 : i32
    return %arg0, %c0_i32 : i32, i32
  }
  func.func @transform_1(%arg0: i32) -> (i32, i32) {
    %c0_i32 = arith.constant 0 : i32
    %c0_i32_0 = arith.constant 0 : i32
    return %arg0, %c0_i32 : i32, i32
  }
  func.func @transform_2(%arg0: i32) -> (i32, i32) {
    %c0_i32 = arith.constant 0 : i32
    %c0_i32_0 = arith.constant 0 : i32
    %c0_i32_1 = arith.constant 0 : i32
    return %c0_i32, %c0_i32_0 : i32, i32
  }
}

</mosaic_0001>

<bundles_post_ra>
// kernel: jsd_loss.1
= control target key start
LH: loop header
LB: loop body
LE: loop exit
PB: predicated region body
PF: predicated region fallthrough
CT: control target
= control target key end

     0   :  { %vm23_vm0 = vcmask 1043456   ;;  %s240_s0 = inlined_call_operand.vmem [shape: f32[4,256], index: 0, kind: input, shape index: {}]   ;;  %s241_s1 = inlined_call_operand.vmem [shape: f32[4,256], index: 1, kind: input, shape index: {}]   ;;  %s242_s2 = inlined_call_operand.hbm [shape: f32[1,1], index: 2, kind: output, shape index: {}]  }
   0x1   :  { %v18_v0 = vld [vmem:[%s240_s0] sm:$0xff] }
   0x2   :  { %v19_v1 = vld [vmem:[%s241_s1] sm:$0xff]  ;;  %v21_v2 = vcombine.high %v18_v0, %v18_v0  ;;  %v24_v3 = vsel %vm23_vm0, %v18_v0, -inf }
   0x3   :  { %v40_v4 = vcombine.high %v19_v1, %v19_v1 }
   0x4   :  { %7 = vsyncpa [#allocation3], 0  ;;  %v25_v5 = vsel %vm23_vm0, %v21_v2, -inf  ;;  %v42_v6 = vsel %vm23_vm0, %v19_v1, -inf  ;;  %v191_v10 = vmov 839922192   ;;  %v33_v12 = vlaneseq }
   0x5   :  { %v43_v7 = vsel %vm23_vm0, %v40_v4, -inf  ;;  %v26_v8 = vmax.f32 %v24_v3, %v25_v5  ;;  %v31_v11 = vunpack.c.l.s4 %v191_v10  ;;  %vm16_vm1 = vcmask 0   ;;  %s193_s0 = smov [#allocation2]  }
   0x6   :  { %v44_v9 = vmax.f32 %v42_v6, %v43_v7  ;;  %v34_v14 = vshrl.u32 %v33_v12, 7  ;;  %v192_v61 = vmov 0.0   ;;  %s140_s1 = sshll.u32 %s193_s0, 4  ;;  %s141_s1 = int_to_ptr.vmem [resolvable:$true] %s140_s1 }
   0x7   :  { %27 = vmax.xlane.f32.xlu0 %v26_v8  ;;  %v32_v13 = vunpack.c.0.s8 %v31_v11  ;;  %17 = vst.msk [vmem:[#allocation2] sm:$0x1] %vm16_vm1, %v192_v61  ;;  %s167_s13 = scalar_lea.vmem %s141_s1, 16  ;;  %s171_s14 = scalar_lea.vmem %s141_s1, 32 }
   0x8   :  { %p168_p0 = scmp.ne.s32.totalorder %s141_s1, %s167_s13  ;;  %p172_p1 = scmp.lt.s32.totalorder %s141_s1, %s141_s1 }
   0x9   :  { %v35_v15 = vsub.s32 %v32_v13, %v34_v14  ;;  %p173_p2 = scmp.lt.s32.totalorder %s171_s14, %s167_s13 }
   0xb   :  { %45 = vmax.xlane.f32.xlu0 %v44_v9  ;;  %p174_p3 = por %p173_p2, %p172_p1 }
   0xd   :  { %p175_p4 = pnand %p174_p3, %p168_p0 }
   0xe   :  { %v129_v6 = vld [vmem:[#allocation2] sm:$0x1] }
  0x94   :  { %v28_v16 = vpop.xlane.xlu0 %27 }
  0x95   :  { %v36_v17 = vrot.slane %v28_v16, %v35_v15 }
  0x97   :  { %v38_v18 = vsub.f32 %v18_v0, %v36_v17 }
  0x98   :  { %v46_v19 = vpop.xlane.xlu0 %45 }
  0x99   :  { %v57_v20 = vmul.f32 1.442695, %v38_v18  ;;  %v54_v21 = vrot.slane %v46_v19, %v35_v15 }
  0x9b   :  { %153 = vpow2.f32 %v57_v20  ;;  %v56_v22 = vsub.f32 %v19_v1, %v54_v21 }
  0x9d   :  { %v79_v23 = vmul.f32 1.442695, %v56_v22 }
  0x9f   :  { %155 = vpow2.f32 %v79_v23 }
  0xa5   :  { %v154_v24 = vpop.eup %153 }
  0xa6   :  { %v60_v25 = vcombine.high %v154_v24, %v154_v24  ;;  %v62_v26 = vsel %vm23_vm0, %v154_v24, 0.0 }
  0xa8   :  { %v63_v27 = vsel %vm23_vm0, %v60_v25, 0.0 }
  0xa9   :  { %v156_v28 = vpop.eup %155  ;;  %v64_v29 = vadd.f32 %v63_v27, %v62_v26 }
  0xaa   :  { %v82_v30 = vcombine.high %v156_v28, %v156_v28  ;;  %v84_v31 = vsel %vm23_vm0, %v156_v28, 0.0 }
  0xab   :  { %65 = vadd.xlane.f32.xlu1 %v64_v29 }
  0xac   :  { %v85_v32 = vsel %vm23_vm0, %v82_v30, 0.0 }
  0xad   :  { %v86_v33 = vadd.f32 %v85_v32, %v84_v31 }
  0xaf   :  { %87 = vadd.xlane.f32.xlu1 %v86_v33 }
 0x138   :  { %v66_v34 = vpop.xlane.xlu1 %65 }
 0x139   :  { %157 = vlog2.f32 %v66_v34 }
 0x13c   :  { %v88_v35 = vpop.xlane.xlu1 %87 }
 0x13d   :  { %159 = vlog2.f32 %v88_v35 }
 0x143   :  { %v158_v36 = vpop.eup %157 }
 0x144   :  { %v68_v37 = vmul.f32 0.6931472, %v158_v36 }
 0x146   :  { %v76_v38 = vrot.slane %v68_v37, %v35_v15 }
 0x147   :  { %v160_v39 = vpop.eup %159 }
 0x148   :  { %v78_v40 = vsub.f32 %v38_v18, %v76_v38  ;;  %v90_v41 = vmul.f32 0.6931472, %v160_v39 }
 0x14a   :  { %v98_v42 = vrot.slane %v90_v41, %v35_v15  ;;  %v101_v43 = vmul.f32 1.442695, %v78_v40 }
 0x14c   :  { %v100_v44 = vsub.f32 %v56_v22, %v98_v42  ;;  %161 = vpow2.f32 %v101_v43 }
 0x14e   :  { %v103_v45 = vmul.f32 1.442695, %v100_v44 }
 0x150   :  { %163 = vpow2.f32 %v103_v45 }
 0x156   :  { %v162_v46 = vpop.eup %161 }
 0x15a   :  { %v164_v47 = vpop.eup %163 }
 0x15b   :  { %v105_v48 = vadd.f32 %v164_v47, %v162_v46 }
 0x15d   :  { %v106_v49 = vmul.f32 0.5, %v105_v48 }
 0x15f   :  { %165 = vlog2.f32 %v106_v49 }
 0x169   :  { %v166_v50 = vpop.eup %165 }
 0x16a   :  { %v108_v51 = vmul.f32 0.6931472, %v166_v50 }
 0x16c   :  { %v109_v52 = vsub.f32 %v78_v40, %v108_v51  ;;  %v111_v53 = vsub.f32 %v100_v44, %v108_v51 }
 0x16e   :  { %v110_v54 = vmul.f32 %v162_v46, %v109_v52  ;;  %v112_v55 = vmul.f32 %v164_v47, %v111_v53 }
 0x170   :  { %v113_v56 = vadd.f32 %v112_v55, %v110_v54 }
 0x172   :  { %v115_v57 = vcombine.high %v113_v56, %v113_v56  ;;  %v117_v58 = vsel %vm23_vm0, %v113_v56, 0.0 }
 0x174   :  { %v118_v59 = vsel %vm23_vm0, %v115_v57, 0.0 }
 0x175   :  { %v119_v60 = vadd.f32 %v118_v59, %v117_v58 }
 0x177   :  { %120 = vadd.xlane.f32.xlu0 %v119_v60 }
 0x204   :  { %v121_v62 = vpop.xlane.xlu0 %120 }
 0x205   :  { %v122_v63 = vsel %vm23_vm0, %v121_v62, 0.0 }
 0x206   :  { %v123_v0 = vrot.slane %v122_v63, 4 }
 0x208   :  { %v124_v1 = vadd.f32 %v123_v0, %v122_v63 }
 0x20a   :  { %v125_v2 = vrot.slane %v124_v1, 2 }
 0x20c   :  { %v126_v3 = vadd.f32 %v125_v2, %v124_v1 }
 0x20e   :  { %v127_v4 = vrot.slane %v126_v3, 1 }
 0x210   :  { %v128_v5 = vadd.f32 %v127_v4, %v126_v3 }
 0x212   :  { %v130_v7 = vmul.f32 0.25, %v128_v5 }
 0x214   :  { %v131_v8 = vadd.f32 %v130_v7, %v129_v6 }
 0x216   :  { %133 = vst.msk [vmem:[#allocation2] sm:$0x1] %vm16_vm1, %v131_v8 }
 0x217   :  { %178 = shalt.err (!%p175_p4)
}
 0x218   :  { %s179_s17 = scalar_lea.hbm %s242_s2, 16 }
 0x219   :  { %p180_p5 = scmp.ne.s32.totalorder %s242_s2, %s179_s17  ;;  %p183_p6 = scmp.lt.u32.totalorder %s179_s17, %s242_s2 }
 0x21b   :  { %p185_p7 = pnand %p183_p6, %p180_p5 }
 0x21d   :  { %188 = shalt.err (!%p185_p7)
}
 0x21e   :  { %143 = dma.vmem_to_hbm [thread:$0]  %s141_s1, 16, %s242_s2, [#allocation3]  }
 0x21f   :  { %189 = dma.done.wait [#allocation3], 16  }
 0x220   :  { %190 = vsyncadd [#allocation3], 4294967280 }
 0x221   :  { %147 = vsyncpa [#allocation3], 1 }

</bundles_post_ra>
